<compile_context>
chip_gen: v6e
topology: v6e:2x2x1
jax: 0.10.0
libtpu: 0.0.40
codegen_flags: <defaults>
</compile_context>

<pallas_src>
import functools

import jax
import jax.numpy as jnp
import numpy as np
from jax.experimental import pallas as pl
from jax.experimental.pallas import tpu as pltpu


# ---------------------------------------------------------------------------
# Kernels
# ---------------------------------------------------------------------------
def _flip_kernel(u_ref, o_ref):
    # Lane reversal of the current (tb, td) tile.  The block-order reversal
    # across feature tiles already happened in the input BlockSpec index_map.
    o_ref[...] = jnp.flip(u_ref[...], axis=-1)


def _onehot_kernel(u_ref, p_ref, o_ref):
    # Fallback in-tile reversal: one-hot permutation matmul.  P is an extra
    # input (built once on the host, DMA'd once, VMEM-resident across the
    # grid).  Exactly one nonzero term per output; f32 accumulation with
    # HIGHEST precision keeps f32/bf16 inputs bit-exact.
    x = u_ref[...].astype(jnp.float32)
    y = jnp.dot(
        x,
        p_ref[...],
        precision=jax.lax.Precision.HIGHEST,
        preferred_element_type=jnp.float32,
    )
    o_ref[...] = y.astype(o_ref.dtype)


# ---------------------------------------------------------------------------
# Tiling / config helpers
# ---------------------------------------------------------------------------
def _vmem_capacity_bytes():
    try:
        cap = getattr(pltpu.get_tpu_info(), "vmem_capacity_bytes", None)
        if cap:
            return int(cap)
    except Exception:
        pass
    return 64 * 1024 * 1024  # conservative default: v7x per-TensorCore VMEM


def _pick_td(D, cap=1024):
    """Largest multiple of 128 that divides D, capped (wide lane-dense tiles)."""
    td = 128
    for cand in range(128, min(D, cap) + 1, 128):
        if D % cand == 0:
            td = cand
    return td


@functools.lru_cache(maxsize=None)
def _flip_lowers(td, dtype_name):
    """One-time probe: does jnp.flip (lax.rev) lower on this Mosaic version?"""
    try:
        aval = jax.ShapeDtypeStruct((8, td), jnp.dtype(dtype_name))
        probe = pl.pallas_call(_flip_kernel, out_shape=aval)
        jax.jit(probe).lower(aval).compile()
        return True
    except Exception:
        return False


def _pallas_reverse(u, td, use_flip):
    B, D = u.shape
    nd = D // td
    itemsize = jnp.dtype(u.dtype).itemsize
    sublane = max(8, 32 // itemsize)  # 8 f32 / 16 bf16 / 32 int8,fp8

    vmem_cap = _vmem_capacity_bytes()
    budget = (3 * vmem_cap) // 8  # ~24 MiB on v7x, ~48 MiB on v5e/v6e
    max_tb = max(sublane, budget // (4 * td * itemsize))
    if B <= max_tb:
        tb = B  # full batch dim in one block row
    else:
        tb = max(sublane, (max_tb // sublane) * sublane)

    # Double-buffered (in + out) working set; request that plus slack —
    # never the whole physical VMEM (leave compiler scratch headroom on v7x).
    working = 4 * tb * td * itemsize
    vmem_limit = int(max(16 << 20, min((3 * vmem_cap) // 4, working + (8 << 20))))

    grid = (pl.cdiv(B, tb), nd)
    # Feature-block order reversal happens here, for free, via DMA addressing.
    in_spec = pl.BlockSpec((tb, td), lambda i, j: (i, nd - 1 - j))
    out_spec = pl.BlockSpec((tb, td), lambda i, j: (i, j))
    out_shape = jax.ShapeDtypeStruct((B, D), u.dtype)
    cparams = pltpu.CompilerParams(
        dimension_semantics=("parallel", "parallel"),
        vmem_limit_bytes=vmem_limit,
    )

    if use_flip:
        return pl.pallas_call(
            _flip_kernel,
            out_shape=out_shape,
            grid=grid,
            in_specs=[in_spec],
            out_specs=out_spec,
            compiler_params=cparams,
        )(u)

    # Fallback path: hoisted one-hot permutation, DMA'd once, VMEM-resident.
    p = jnp.asarray(np.flipud(np.eye(td, dtype=np.float32)))
    return pl.pallas_call(
        _onehot_kernel,
        out_shape=out_shape,
        grid=grid,
        in_specs=[in_spec, pl.BlockSpec((td, td), lambda i, j: (0, 0))],
        out_specs=out_spec,
        compiler_params=cparams,
    )(u, p)


def _reverse_features(u):
    """Reverse the last (feature) axis of a (B, D) array."""
    assert u.ndim == 2, "Reverse expects (batch, features)"
    _, D = u.shape
    # Lane-sparse (D < 128) or ragged (D % 128 != 0) feature axes: XLA's fused
    # slice-reverse beats any Pallas kernel here (masked vst, wasted lanes),
    # and the index_map block-order trick needs 128-aligned feature blocks.
    if D < 128 or D % 128 != 0:
        return u[:, ::-1]

    td = _pick_td(D)
    use_flip = _flip_lowers(td, jnp.dtype(u.dtype).name)
    if not use_flip:
        # With the matmul fallback the per-tile cost scales with td, so keep
        # the feature tile at the 128-lane minimum.
        td = 128
    return _pallas_reverse(u, td, use_flip)


# ---------------------------------------------------------------------------
# Module wrapper
# ---------------------------------------------------------------------------
class ReversePallas:
    """Pallas equivalent of maf/normflow.py::Reverse."""

    def __init__(self, D):
        self.D = D

    def forward(self, u):
        assert u.shape[-1] == self.D
        return _reverse_features(u)

    def inverse(self, x):
        # The reversal permutation is its own inverse.
        assert x.shape[-1] == self.D
        return _reverse_features(x)

    def logdetJ(self, u, x):
        # log|det J| of a permutation is exactly 0; no kernel, no DMA of x.
        return jnp.zeros_like(x[:, 0:1])


if __name__ == "__main__":
    # --- Pallas-kernel path: lane-dense feature axis (multiple of 128) ------
    B, D = 16, 256
    key = jax.random.PRNGKey(0)
    u = jax.random.uniform(key, (B, D), dtype=jnp.float32)
    layer = ReversePallas(D)

    x = layer.forward(u)
    jax.block_until_ready(x)
    ref = u[:, ::-1]
    assert x.shape == (B, D) and x.dtype == u.dtype
    assert jnp.allclose(x, ref, rtol=0.0, atol=1e-6), "forward mismatch vs reference"

    u_back = layer.inverse(x)
    jax.block_until_ready(u_back)
    assert jnp.allclose(u_back, u, rtol=0.0, atol=1e-6), "inverse round-trip mismatch"

    ldj = layer.logdetJ(u, x)
    jax.block_until_ready(ldj)
    assert ldj.shape == (B, 1) and bool(jnp.all(ldj == 0.0))

    # --- Small-D path (original module's toy size): wrapper-level XLA reverse
    B2, D2 = 8, 16
    u2 = jax.random.uniform(jax.random.PRNGKey(1), (B2, D2), dtype=jnp.float32)
    layer2 = ReversePallas(D2)
    x2 = layer2.forward(u2)
    jax.block_until_ready(x2)
    assert jnp.array_equal(x2, u2[:, ::-1])
    assert jnp.array_equal(layer2.inverse(x2), u2)

    print("KERNEL_OK")
</pallas_src>

<mosaic_0001>
module attributes {stable_mosaic.version = 11 : i64} {
  func.func @_onehot_kernel(%arg0: i32, %arg1: i32, %arg2: memref<16x128xf32, #tpu.memory_space<vmem>>, %arg3: memref<128x128xf32, #tpu.memory_space<vmem>>, %arg4: memref<16x128xf32, #tpu.memory_space<vmem>>) attributes {dimension_semantics = [#tpu.dimension_semantics<parallel>, #tpu.dimension_semantics<parallel>], iteration_bounds = array<i64: 1, 2>, scalar_prefetch = 0 : i64, scratch_operands = 0 : i64, tpu.core_type = #tpu.core_type<tc>, window_params = [{transform_indices = @transform_0, window_bounds = array<i64: 16, 128>}, {pipeline_mode = #tpu.pipeline_mode<synchronous>, transform_indices = @transform_1, window_bounds = array<i64: 128, 128>}, {transform_indices = @transform_2, window_bounds = array<i64: 16, 128>}]} {
    %c0 = arith.constant 0 : index
    %c0_0 = arith.constant 0 : index
    %0 = vector.load %arg2[%c0, %c0_0] : memref<16x128xf32, #tpu.memory_space<vmem>>, vector<16x128xf32>
    %c0_1 = arith.constant 0 : index
    %c0_2 = arith.constant 0 : index
    %1 = vector.load %arg3[%c0_1, %c0_2] : memref<128x128xf32, #tpu.memory_space<vmem>>, vector<128x128xf32>
    %cst = arith.constant dense<0.000000e+00> : vector<16x128xf32>
    %2 = tpu.matmul %0, %1, %cst {dimension_numbers = #tpu.dot_dimension_numbers<[1], [0], [0], [1], [0, 0, 1, 1], [], []>, precision = #tpu.contract_precision<fp32>} : vector<16x128xf32>, vector<128x128xf32>, vector<16x128xf32> -> vector<16x128xf32>
    %c0_3 = arith.constant 0 : index
    %c0_4 = arith.constant 0 : index
    %3 = vector.load %arg4[%c0_3, %c0_4] : memref<16x128xf32, #tpu.memory_space<vmem>>, vector<16x128xf32>
    tpu.vector_store %arg4[%c0_3, %c0_4], %2 {strides = array<i32>} : memref<16x128xf32, #tpu.memory_space<vmem>>, vector<16x128xf32>,
    return
  }
  func.func @transform_0(%arg0: i32, %arg1: i32) -> (i32, i32) {
    %c1_i32 = arith.constant 1 : i32
    %0 = arith.subi %c1_i32, %arg1 : i32
    %c0_i32 = arith.constant 0 : i32
    return %arg0, %0 : i32, i32
  }
  func.func @transform_1(%arg0: i32, %arg1: i32) -> (i32, i32) {
    %c0_i32 = arith.constant 0 : i32
    %c0_i32_0 = arith.constant 0 : i32
    %c0_i32_1 = arith.constant 0 : i32
    return %c0_i32, %c0_i32_0 : i32, i32
  }
  func.func @transform_2(%arg0: i32, %arg1: i32) -> (i32, i32) {
    %c0_i32 = arith.constant 0 : i32
    return %arg0, %arg1 : i32, i32
  }
}

</mosaic_0001>

<bundles_post_ra>
// kernel: tpu_custom_call.1
= control target key start
LH: loop header
LB: loop body
LE: loop exit
PB: predicated region body
PF: predicated region fallthrough
CT: control target
= control target key end

     0   :  { %s2211_s0 = inlined_call_operand.hbm [shape: f32[16,256], index: 0, kind: input, shape index: {}]   ;;  %s2212_s1 = inlined_call_operand.hbm [shape: f32[128,128], index: 1, kind: input, shape index: {}]   ;;  %s2213_s2 = inlined_call_operand.hbm [shape: f32[16,256], index: 2, kind: output, shape index: {}]  }
   0x1   :  { %2226 = sst [smem:[#allocation15_spill]] %s2212_s1 }
   0x2   :  { %7 = vsyncpa [#allocation3], 0 }
   0x3   :  { %9 = vsyncpa [#allocation3 + $0x1], 0 }
   0x4   :  { %10 = vsyncpa [#allocation6], 0 }
   0x5   :  { %11 = vsyncpa [#allocation4], 0 }
   0x6   :  { %13 = vsyncpa [#allocation4 + $0x1], 0  ;;  %s1640_s9 = smov 0   ;;  %s1642_s10 = smov 0  }
   0x7   :  { %s1644_s11 = smov 0   ;;  %s1646_s12 = smov 0  }
   0x8   :  { %s1648_s13 = smov 0   ;;  %s1650_s14 = smov 0  }
   0x9   :  { %s1652_s15 = smov 0   ;;  %s1654_s16 = smov 0  }
   0xa   :  { %s1656_s17 = smov 0  }
   0xb LB: > { %2227 = sst [smem:[#allocation11_spill]] %s1582_s9  ;;  %s1016_s18 = sadd.s32 4294967295, %s1614_s17   ;;  %s1614_s17 = sphi %s1656_s17, %s19_s17   ;;  %s1610_s16 = sphi %s1654_s16, %s2260_s16   ;;  %s1606_s15 = sphi %s1652_s15, %s2259_s15   ;;  %s1602_s14 = sphi %s1650_s14, %s2258_s14   ;;  %s1598_s13 = sphi %s1648_s13, %s2257_s13   ;;  %s1594_s12 = sphi %s1646_s12, %s2256_s12   ;;  %s1590_s11 = sphi %s1644_s11, %s2255_s11   ;;  %s1586_s10 = sphi %s1642_s10, %s2254_s10   ;;  %s1582_s9 = sphi %s1640_s9, %s2253_s9  }
   0xc   : > { %2228 = sst [smem:[#allocation12_spill]] %s1614_s17  ;;  %s1017_s19 = sadd.s32 4294967294, %s1614_s17  }
   0xd   : > { %p49_p0 = scmp.ne.s32.totalorder %s1602_s14, %s1598_s13  ;;  %p50_p1 = scmp.eq.s32.totalorder %s1614_s17, 0 }
   0xe   : > { %p55_p2 = scmp.ne.s32.totalorder %s1598_s13, %s1594_s12  ;;  %p1689_p3 = scmp.eq.s32.totalorder %s1016_s18, 0 }
   0xf   : > { %p1693_p4 = por %p50_p1, %p49_p0  ;;  %s91_s22 = sadd.s32 1, %s1590_s11 }
  0x10   : > { %s2229_s20 = scalar_select %p1689_p3, 1, 0 }
  0x11   : > { %p1700_p5 = por %p1689_p3, %p55_p2  ;;  %p101_p6 = scmp.ne.s32.totalorder %s1590_s11, %s1586_s10 }
  0x12   : > { %p102_p7 = scmp.eq.s32.totalorder %s1016_s18, 1  ;;  %p107_p8 = scmp.ne.s32.totalorder %s1586_s10, %s1582_s9 }
  0x13   : > { %p108_p9 = scmp.eq.s32.totalorder %s1017_s19, 1  ;;  %p1018_p10 = scmp.ge.s32.totalorder %s1614_s17, 1 }
  0x14   : > { %p1709_p11 = por %p102_p7, %p101_p6  ;;  %p115_p12 = scmp.lt.s32.totalorder %s1614_s17, 3 }
  0x15   : > { %p1714_p13 = por %p108_p9, %p107_p8  ;;  %s1616_s27 = smov [#allocation5]  }
  0x16   : > { %s2232_s24 = scalar_select %p1709_p11, 1, 0 }
  0x17   : > { %s2233_s25 = scalar_select %p1714_p13, 1, 0 }
  0x18   : > { %p1718_p0 = pnand %p1018_p10, %p115_p12  ;;  %s127_s28 = sshll.u32 %s1616_s27, 4  ;;  %s128_s28 = int_to_ptr.vmem [resolvable:$true] %s127_s28 }
  0x19   : > { %2234 = sst [smem:[#allocation13_spill]] %s2233_s25  ;;  %p1370_p7 = scmp.lt.s32.totalorder %s1614_s17, 2 }
  0x1a   : > { %p1357_p1 = pneg %p1718_p0  ;;  %s1463_s4 = scalar_lea.vmem %s128_s28, 2048 }
  0x1b   : > { %p1735_p8 = pnand %p1370_p7, %p1693_p4  ;;  %p1464_p10 = scmp.ne.s32.totalorder %s128_s28, %s1463_s4 }
  0x1c   : > { %p1727_p6 = pnand %p1357_p1, %p1689_p3  ;;  %p1471_p2 = scmp.lt.s32.totalorder %s128_s28, %s128_s28 }
  0x1d   : > { %p1472_p11 = scmp.lt.s32.totalorder %s1463_s4, %s1463_s4 }
  0x1e   : > { %p1454_p9 = pneg %p1727_p6 }
  0x1f   : > { %p1473_p1 = por %p1472_p11, %p1471_p2 }
  0x20   : > { %p1466_p12 = pnand %p1464_p10, %p1454_p9 }
  0x22   : > { %p1467_p13 = pneg %p1466_p12 }
  0x24   : > { %p1474_p3 = pnand %p1473_p1, %p1467_p13 }
  0x26   : > { %1477 = shalt.err (!%p1474_p3)
}
  0x27   : > { %s2217_s5 = smov 128   ;;  %s2218_s6 = smov 8  }
  0x28   : > { %s2238_s1 = sld [smem:[#allocation15_spill]]  ;;  %s28_s12 = sadd.s32 1, %s1610_s16 }
  0x29   : > { %s35_s18 = ssub.s32 1, %s1610_s16  ;;  %p29_p3 = scmp.ge.s32.totalorder %s28_s12, 2 }
  0x2a   : > { %s141_s19 = sand.u32 1, %s1602_s14   ;;  %s1754_s27 = sshll.u32 %s35_s18, 7 }
  0x2b   : > { %s1021_s21 = sshll.u32 %s141_s19, 4  ;;  %s2262_s12 = smov (%p29_p3, %s28_s12), 0 }
  0x2c   : > { %2239 = sst [smem:[#allocation14_spill]] %s2262_s12  ;;  %s36_s29 = ssub.s32 1, %s2262_s12 }
  0x2d   : > { %s87_s4 = ssub.s32 %s1610_s16, %s2262_s12  ;;  %s38_s30 = ssub.s32 %s35_s18, %s36_s29 }
  0x2e   : > { %1360 = dma.hbm_to_vmem [thread:$0]  (!%p1727_p6), %s2238_s1, 2048, %s128_s28, [#allocation6], %s2217_s5, %s2217_s5, %s2218_s6  }
  0x2f   : > { %p89_p4 = scmp.eq.s32.totalorder %s87_s4, 0  ;;  %p40_p11 = scmp.eq.s32.totalorder %s38_s30, 0 }
  0x30   : > { %s154_s8 = scalar_lea.hbm %s2211_s0, %s1754_s27  ;;  %s2240_s6 = sadd.s32 1, %s1602_s14 }
  0x31   : > { %s1766_s5 = scalar_select %p89_p4, %s1590_s11, %s91_s22  }
  0x32   : > { %s1771_s1 = scalar_select %p40_p11, %s1602_s14, %s2240_s6  }
  0x33   : > { %s145_s17 = scalar_lea.vmem [#allocation2], %s1021_s21  ;;  %s142_s9 = scalar_lea.sflag [#allocation3], %s141_s19 }
  0x34   : > { %s155_s25 = sshll.u32 %s145_s17, 4  ;;  %p1480_p13 = pneg %p1735_p8  ;;  %s156_s25 = int_to_ptr.vmem [resolvable:$true] %s155_s25 }
  0x35   : > { %s1491_s12 = scalar_lea.vmem %s156_s25, 256  ;;  %s1619_s30 = smov [#allocation2]  }
  0x36   : > { %p1492_p2 = scmp.ne.s32.totalorder %s156_s25, %s1491_s12  ;;  %s1496_s18 = sshll.u32 %s1619_s30, 4  ;;  %s1497_s18 = int_to_ptr.vmem [resolvable:$false] %s1496_s18 }
  0x37   : > { %s1498_s27 = scalar_lea.vmem %s1497_s18, 512  ;;  %p1499_p9 = scmp.lt.s32.totalorder %s156_s25, %s1497_s18 }
  0x38   : > { %p1494_p6 = pnand %p1492_p2, %p1480_p13  ;;  %p1500_p10 = scmp.lt.s32.totalorder %s1498_s27, %s1491_s12 }
  0x3a   : > { %p1495_p7 = pneg %p1494_p6  ;;  %p1501_p12 = por %p1500_p10, %p1499_p9 }
  0x3c   : > { %p1502_p1 = pnand %p1501_p12, %p1495_p7 }
  0x3e   : > { %1505 = shalt.err (!%p1502_p1)
}
  0x3f   : > { %s1620_s22 = smov 256   ;;  %s2241_s17 = smov 8  }
  0x40   : > { %s2242_s6 = smov 128   ;;  %167 = sbr.rel (%p1718_p0) target bundleno = 397 (0x18d), region = 28 }
  0x41   : > { %1364 = dma.hbm_to_vmem [thread:$0]  (!%p1735_p8), %s154_s8, 256, %s156_s25, %s142_s9, %s1620_s22, %s2242_s6, %s2241_s17  }
  0x42   : > { %s169_s19 = sand.u32 (!%p1718_p0), 1, %s1598_s13  }
  0x43   : > { %s1782_s21 = sshll.u32 (!%p1718_p0), %s169_s19, 4  ;;  %s170_s29 = scalar_lea.sflag (!%p1718_p0), [#allocation3], %s169_s19 }
  0x44   : > { %s173_s12 = scalar_lea.vmem (!%p1718_p0), [#allocation2], %s1782_s21 }
  0x45   : > { %1569 = dma.done.wait (%p1700_p5), %s170_s29, 256  }
  0x46   : > { %1571 = vsyncadd (%p1700_p5), %s170_s29, 4294967040  ;;  %p2243_p3 = scmp.ne.s32.totalorder %s2229_s20, 0 }
  0x48   : > { %1573 = dma.done.wait (%p2243_p3), [#allocation6], 2048  }
  0x49   : > { %1575 = vsyncadd (%p2243_p3), [#allocation6], 4294965248  ;;  %v218_v0 = vld [vmem:[#allocation5 + $0x78] sm:$0xff]  ;;  %v217_v1 = vld [vmem:[#allocation5 + $0x70] sm:$0xff]  ;;  %s195_s9 = sand.u32 1, %s1586_s10   ;;  %s1028_s26 = sshll.u32 %s1606_s15, 7 }
  0x4a   : > { %v216_v2 = vld [vmem:[#allocation5 + $0x68] sm:$0xff]  ;;  %v1793_v3 = vand.u32 4294901760, %v218_v0  ;;  %v1795_v4 = vand.u32 4294901760, %v217_v1  ;;  %v215_v6 = vld [vmem:[#allocation5 + $0x60] sm:$0xff]  ;;  %v214_v7 = vld [vmem:[#allocation5 + $0x58] sm:$0xff]  ;;  %s1026_s20 = sshll.u32 %s195_s9, 4  ;;  %s2154_s7 = scalar_lea.hbm %s2213_s2, %s1028_s26 }
  0x4b   : > { %v1797_v5 = vand.u32 4294901760, %v216_v2  ;;  %v213_v8 = vld [vmem:[#allocation5 + $0x50] sm:$0xff]  ;;  %v1799_v9 = vand.u32 4294901760, %v215_v6  ;;  %v1801_v10 = vand.u32 4294901760, %v214_v7  ;;  %v212_v12 = vld [vmem:[#allocation5 + $0x48] sm:$0xff]  ;;  %v211_v13 = vld [vmem:[#allocation5 + $0x40] sm:$0xff] }
  0x4c   : > { %v1803_v11 = vand.u32 4294901760, %v213_v8  ;;  %1139 = vmatprep.subr.mxu0 %v1793_v3  ;;  %v1807_v14 = vsub.f32 %v218_v0, %v1793_v3  ;;  %v1810_v15 = vsub.f32 %v217_v1, %v1795_v4  ;;  %v1812_v16 = vand.u32 4294901760, %v212_v12  ;;  %v210_v18 = vld [vmem:[#allocation5 + $0x38] sm:$0xff]  ;;  %v209_v25 = vld [vmem:[#allocation5 + $0x30] sm:$0xff]  ;;  %v208_v35 = vld [vmem:[#allocation5 + $0x28] sm:$0xff]  ;;  %s197_s23 = scalar_lea.vmem [#allocation7], %s1026_s20 }
  0x4d   : > { %v1815_v17 = vsub.f32 %v216_v2, %v1797_v5  ;;  %1140 = vmatpush3.msra.mxu0 %v1793_v3  ;;  %v1819_v19 = vsub.f32 %v215_v6, %v1799_v9  ;;  %v1822_v20 = vsub.f32 %v214_v7, %v1801_v10  ;;  %v1834_v24 = vand.u32 4294901760, %v211_v13  ;;  %v207_v40 = vld [vmem:[#allocation5 + $0x20] sm:$0xff]  ;;  %v206_v48 = vld [vmem:[#allocation5 + $0x18] sm:$0xff]  ;;  %v205_v59 = vld [vmem:[#allocation5 + $0x10] sm:$0xff]  ;;  %s921_s25 = sshll.u32 %s197_s23, 4  ;;  %s2156_s28 = scalar_lea.sflag [#allocation4], %s195_s9  ;;  %s2149_s25 = int_to_ptr.vmem [resolvable:$true] %s921_s25 }
  0x4e   : > { %1141 = vmatprep.subr.mxu0 %v1795_v4  ;;  %v1826_v21 = vand.u32 4294901760, %v1807_v14  ;;  %v1829_v22 = vand.u32 4294901760, %v1810_v15  ;;  %v1840_v27 = vand.u32 4294901760, %v210_v18  ;;  %v1846_v29 = vsub.f32 %v213_v8, %v1803_v11  ;;  %v201_v49 = vld [vmem:[%s173_s12] sm:$0xff]  ;;  %v202_v54 = vld [vmem:[%s173_s12 + $0x8] sm:$0xff]  ;;  %s1506_s15 = scalar_lea.vmem %s2149_s25, 256 }
  0x4f   : > { %v1832_v23 = vand.u32 4294901760, %v1815_v17  ;;  %1142 = vmatpush3.msra.mxu0 %v1795_v4  ;;  %v1838_v26 = vand.u32 4294901760, %v1819_v19  ;;  %v1843_v28 = vand.u32 4294901760, %v1822_v20  ;;  %v1856_v33 = vsub.f32 %v212_v12, %v1812_v16  ;;  %v204_v2 = vld [vmem:[#allocation5 + $0x8] sm:$0xff]  ;;  %p1507_p5 = scmp.ne.s32.totalorder %s2149_s25, %s1506_s15  ;;  %p2246_p0 = scmp.ne.s32.totalorder %s2232_s24, 0 }
  0x50   : > { %1143 = vmatprep.subr.mxu0 %v1797_v5  ;;  %v324_v30 = vsub.f32 %v1807_v14, %v1826_v21  ;;  %v331_v31 = vsub.f32 %v1810_v15, %v1829_v22  ;;  %v1859_v34 = vand.u32 4294901760, %v209_v25  ;;  %v1865_v39 = vand.u32 4294901760, %v1846_v29  ;;  %s1621_s8 = smov [#allocation7]  }
  0x51   : > { %v338_v32 = vsub.f32 %v1815_v17, %v1832_v23  ;;  %1144 = vmatpush3.msra.mxu0 %v1797_v5  ;;  %v345_v38 = vsub.f32 %v1819_v19, %v1838_v26  ;;  %v352_v41 = vsub.f32 %v1822_v20, %v1843_v28  ;;  %v1871_v42 = vand.u32 4294901760, %v1856_v33  ;;  %p1508_p8 = pnand %p1507_p5, %p2246_p0  ;;  %s1510_s30 = sshll.u32 %s1621_s8, 4  ;;  %s1511_s30 = int_to_ptr.vmem [resolvable:$false] %s1510_s30 }
  0x52   : > { %1145 = vmatprep.subr.mxu0 %v1799_v9  ;;  %v325_v36 = vand.u32 4294901760, %v324_v30  ;;  %v332_v37 = vand.u32 4294901760, %v331_v31  ;;  %v1874_v43 = vsub.f32 %v211_v13, %v1834_v24  ;;  %v1877_v45 = vand.u32 4294901760, %v208_v35  ;;  %s1512_s18 = scalar_lea.vmem %s1511_s30, 512  ;;  %p1513_p11 = scmp.lt.s32.totalorder %s2149_s25, %s1511_s30 }
  0x53   : > { %1146 = vmatpush3.msra.mxu0 %v1799_v9  ;;  %v339_v44 = vand.u32 4294901760, %v338_v32  ;;  %v1880_v46 = vsub.f32 %v210_v18, %v1840_v27  ;;  %v1883_v47 = vand.u32 4294901760, %v207_v40  ;;  %v346_v50 = vand.u32 4294901760, %v345_v38  ;;  %v203_v18 = vld [vmem:[#allocation5] sm:$0xff]  ;;  %p1509_p4 = pneg %p1508_p8  ;;  %p1514_p13 = scmp.lt.s32.totalorder %s1512_s18, %s1506_s15 }
  0x54   : > { %1147 = vmatprep.subr.mxu0 %v1801_v10  ;;  %1174 = vmatprep.subr.mxu1 %v325_v36  ;;  %v359_v51 = vsub.f32 %v1846_v29, %v1865_v39  ;;  %v1891_v52 = vand.u32 4294901760, %v1874_v43  ;;  %v1894_v53 = vsub.f32 %v209_v25, %v1859_v34  ;;  %v353_v55 = vand.u32 4294901760, %v352_v41 }
  0x55   : > { %1148 = vmatpush3.msra.mxu0 %v1801_v10  ;;  %1175 = vmatpush3.msra.mxu1 %v325_v36  ;;  %v366_v56 = vsub.f32 %v1856_v33, %v1871_v42  ;;  %v1902_v57 = vand.u32 4294901760, %v206_v48  ;;  %v1905_v58 = vand.u32 4294901760, %v1880_v46  ;;  %v1908_v60 = vsub.f32 %v208_v35, %v1877_v45  ;;  %p1515_p2 = por %p1514_p13, %p1513_p11 }
  0x56   : > { %1149 = vmatprep.subr.mxu0 %v1803_v11  ;;  %1176 = vmatprep.subr.mxu1 %v332_v37  ;;  %v1910_v61 = vand.u32 4294901760, %v201_v49  ;;  %v1913_v62 = vand.u32 4294901760, %v202_v54  ;;  %v360_v63 = vand.u32 4294901760, %v359_v51  ;;  %v373_v0 = vsub.f32 %v1874_v43, %v1891_v52 }
  0x57   : > { %1150 = vmatpush3.msra.mxu0 %v1803_v11  ;;  %1177 = vmatpush3.msra.mxu1 %v332_v37  ;;  %v1919_v1 = vand.u32 4294901760, %v1894_v53  ;;  %v1922_v6 = vsub.f32 %v207_v40, %v1883_v47  ;;  %v367_v7 = vand.u32 4294901760, %v366_v56  ;;  %v1925_v8 = vand.u32 4294901760, %v205_v59  ;;  %p1516_p6 = pnand %p1515_p2, %p1509_p4 }
  0x58   : > { %1151 = vmatprep.subr.mxu0 %v1812_v16  ;;  %1178 = vmatprep.subr.mxu1 %v339_v44  ;;  %v380_v12 = vsub.f32 %v1880_v46, %v1905_v58  ;;  %v1931_v13 = vand.u32 4294901760, %v1908_v60  ;;  %v1934_v25 = vsub.f32 %v201_v49, %v1910_v61  ;;  %v1937_v30 = vsub.f32 %v206_v48, %v1902_v57 }
  0x59   : > { %1152 = vmatpush3.msra.mxu0 %v1812_v16  ;;  %1179 = vmatpush3.msra.mxu1 %v339_v44  ;;  %v1940_v31 = vand.u32 4294901760, %v204_v2  ;;  %v1943_v32 = vsub.f32 %v202_v54, %v1913_v62  ;;  %v374_v35 = vand.u32 4294901760, %v373_v0  ;;  %v387_v36 = vsub.f32 %v1894_v53, %v1919_v1 }
  0x5a   : > { %1153 = vmatprep.subr.mxu0 %v1834_v24  ;;  %1180 = vmatprep.subr.mxu1 %v346_v50  ;;  %v1949_v37 = vand.u32 4294901760, %v1922_v6  ;;  %v1952_v38 = vand.u32 4294901760, %v203_v18  ;;  %v1955_v40 = vsub.f32 %v205_v59, %v1925_v8  ;;  %v381_v41 = vand.u32 4294901760, %v380_v12 }
  0x5b   : > { %1154 = vmatpush3.msra.mxu0 %v1834_v24  ;;  %1181 = vmatpush3.msra.mxu1 %v346_v50  ;;  %v394_v44 = vsub.f32 %v1908_v60, %v1931_v13  ;;  %v2225_v48 = vand.u32 4294901760, %v1934_v25  ;;  %v1962_v49 = vand.u32 4294901760, %v1937_v30  ;;  %v2224_v50 = vand.u32 4294901760, %v1943_v32 }
  0x5c   : > { %1155 = vmatprep.subr.mxu0 %v1840_v27  ;;  %1182 = vmatprep.subr.mxu1 %v353_v55  ;;  %v1967_v51 = vsub.f32 %v204_v2, %v1940_v31  ;;  %v388_v54 = vand.u32 4294901760, %v387_v36  ;;  %v1974_v56 = vand.u32 4294901760, %v1955_v40  ;;  %v1977_v59 = vsub.f32 %v203_v18, %v1952_v38 }
  0x5d   : > { %1156 = vmatpush3.msra.mxu0 %v1840_v27  ;;  %1183 = vmatpush3.msra.mxu1 %v353_v55  ;;  %v401_v55 = vsub.f32 %v1922_v6, %v1949_v37  ;;  %v303_v0 = vsub.f32 %v1934_v25, %v2225_v48  ;;  %v408_v2 = vsub.f32 %v1937_v30, %v1962_v49 }
  0x5e   : > { %1157 = vmatprep.subr.mxu0 %v1859_v34  ;;  %1184 = vmatprep.subr.mxu1 %v360_v63  ;;  %v1990_v12 = vand.u32 4294901760, %v1967_v51  ;;  %v1997_v36 = vand.u32 4294901760, %v1977_v59 }
  0x5f   : > { %1158 = vmatpush3.msra.mxu0 %v1859_v34  ;;  %1185 = vmatpush3.msra.mxu1 %v360_v63  ;;  %v395_v63 = vand.u32 4294901760, %v394_v44  ;;  %v402_v18 = vand.u32 4294901760, %v401_v55  ;;  %v409_v44 = vand.u32 4294901760, %v408_v2 }
  0x60   : > { %1159 = vmatprep.subr.mxu0 %v1877_v45  ;;  %1186 = vmatprep.subr.mxu1 %v367_v7  ;;  %v422_v55 = vsub.f32 %v1967_v51, %v1990_v12  ;;  %v429_v48 = vsub.f32 %v1977_v59, %v1997_v36 }
  0x61   : > { %1160 = vmatpush3.msra.mxu0 %v1877_v45  ;;  %1187 = vmatpush3.msra.mxu1 %v367_v7  ;;  %v313_v7 = vsub.f32 %v1943_v32, %v2224_v50 }
  0x62   : > { %1161 = vmatprep.subr.mxu0 %v1883_v47  ;;  %1188 = vmatprep.subr.mxu1 %v374_v35 }
  0x63   : > { %1162 = vmatpush3.msra.mxu0 %v1883_v47  ;;  %1189 = vmatpush3.msra.mxu1 %v374_v35  ;;  %v415_v35 = vsub.f32 %v1955_v40, %v1974_v56  ;;  %v314_v50 = vand.u32 4294901760, %v313_v7 }
  0x64   : > { %1163 = vmatprep.subr.mxu0 %v1902_v57  ;;  %1190 = vmatprep.subr.mxu1 %v381_v41 }
  0x65   : > { %1164 = vmatpush3.msra.mxu0 %v1902_v57  ;;  %1191 = vmatpush3.msra.mxu1 %v381_v41  ;;  %v304_v41 = vand.u32 4294901760, %v303_v0  ;;  %v430_v0 = vand.u32 4294901760, %v429_v48 }
  0x66   : > { %1165 = vmatprep.subr.mxu0 %v1925_v8  ;;  %1192 = vmatprep.subr.mxu1 %v388_v54 }
  0x67   : > { %1166 = vmatpush3.msra.mxu0 %v1925_v8  ;;  %1193 = vmatpush3.msra.mxu1 %v388_v54  ;;  %v416_v54 = vand.u32 4294901760, %v415_v35 }
  0x68   : > { %1167 = vmatprep.subr.mxu0 %v1940_v31  ;;  %1194 = vmatprep.subr.mxu1 %v395_v63 }
  0x69   : > { %1168 = vmatpush3.msra.mxu0 %v1940_v31  ;;  %1195 = vmatpush3.msra.mxu1 %v395_v63  ;;  %v423_v63 = vand.u32 4294901760, %v422_v55 }
  0x6a   : > { %1169 = vmatprep.subr.mxu0 %v1952_v38  ;;  %1196 = vmatprep.subr.mxu1 %v402_v18 }
  0x6b   : > { %1170 = vmatpush3.msra.mxu0 %v1952_v38  ;;  %1197 = vmatpush3.msra.mxu1 %v402_v18 }
  0x6c   : > { %1171 = vmatprep.mubr.f32.mxu0 %v304_v41  ;;  %1198 = vmatprep.subr.mxu1 %v409_v44 }
  0x6d   : > { %1209 = vmatprep.subr.mxu0 %v1807_v14  ;;  %1172 = vmatmul.mubr.f32.vlgmr.msra.gmra.mxu0 %v314_v50 }
  0x6e   : > { %1199 = vmatpush3.msra.mxu1 %v409_v44  ;;  %1210 = vmatpush3.msra.mxu0 %v1807_v14  ;;  %v2244_v14 = vand.u32 4294901760, %v1934_v25 }
  0x6f   : > { %1200 = vmatprep.subr.mxu1 %v416_v54  ;;  %1211 = vmatprep.subr.mxu0 %v1810_v15 }
  0x70   : > { %1201 = vmatpush3.msra.mxu1 %v416_v54  ;;  %1212 = vmatpush3.msra.mxu0 %v1810_v15  ;;  %v2245_v15 = vand.u32 4294901760, %v1943_v32 }
  0x71   : > { %1202 = vmatprep.subr.mxu1 %v423_v63  ;;  %1213 = vmatprep.subr.mxu0 %v1815_v17 }
  0x72   : > { %1203 = vmatpush3.msra.mxu1 %v423_v63  ;;  %1214 = vmatpush3.msra.mxu0 %v1815_v17 }
  0x73   : > { %1204 = vmatprep.subr.mxu1 %v430_v0  ;;  %1215 = vmatprep.subr.mxu0 %v1819_v19 }
  0x74   : > { %1205 = vmatpush3.msra.mxu1 %v430_v0  ;;  %1206 = vmatprep.mubr.f32.mxu1 %v1910_v61 }
  0x75   : > { %1216 = vmatpush3.msra.mxu0 %v1819_v19  ;;  %1207 = vmatmul.mubr.f32.vlgmr.msra.gmra.mxu1 %v1913_v62 }
  0x76   : > { %1217 = vmatprep.subr.mxu0 %v1822_v20  ;;  %1244 = vmatprep.subr.mxu1 %v1793_v3 }
  0x77   : > { %1218 = vmatpush3.msra.mxu0 %v1822_v20  ;;  %1245 = vmatpush3.msra.mxu1 %v1793_v3 }
  0x78   : > { %1219 = vmatprep.subr.mxu0 %v1846_v29  ;;  %1246 = vmatprep.subr.mxu1 %v1795_v4 }
  0x79   : > { %1220 = vmatpush3.msra.mxu0 %v1846_v29  ;;  %1247 = vmatpush3.msra.mxu1 %v1795_v4 }
  0x7a   : > { %1221 = vmatprep.subr.mxu0 %v1856_v33  ;;  %1248 = vmatprep.subr.mxu1 %v1797_v5 }
  0x7b   : > { %1222 = vmatpush3.msra.mxu0 %v1856_v33  ;;  %1249 = vmatpush3.msra.mxu1 %v1797_v5 }
  0x7c   : > { %1223 = vmatprep.subr.mxu0 %v1874_v43  ;;  %1250 = vmatprep.subr.mxu1 %v1799_v9 }
  0x7d   : > { %1224 = vmatpush3.msra.mxu0 %v1874_v43  ;;  %1251 = vmatpush3.msra.mxu1 %v1799_v9 }
  0x7e   : > { %1225 = vmatprep.subr.mxu0 %v1880_v46  ;;  %1252 = vmatprep.subr.mxu1 %v1801_v10 }
  0x7f   : > { %1226 = vmatpush3.msra.mxu0 %v1880_v46  ;;  %1253 = vmatpush3.msra.mxu1 %v1801_v10 }
  0x80   : > { %1227 = vmatprep.subr.mxu0 %v1894_v53  ;;  %1254 = vmatprep.subr.mxu1 %v1803_v11 }
  0x81   : > { %1228 = vmatpush3.msra.mxu0 %v1894_v53  ;;  %1255 = vmatpush3.msra.mxu1 %v1803_v11 }
  0x82   : > { %1229 = vmatprep.subr.mxu0 %v1908_v60  ;;  %1256 = vmatprep.subr.mxu1 %v1812_v16 }
  0x83   : > { %1230 = vmatpush3.msra.mxu0 %v1908_v60  ;;  %1257 = vmatpush3.msra.mxu1 %v1812_v16 }
  0x84   : > { %1231 = vmatprep.subr.mxu0 %v1922_v6  ;;  %1258 = vmatprep.subr.mxu1 %v1834_v24 }
  0x85   : > { %1232 = vmatpush3.msra.mxu0 %v1922_v6  ;;  %1259 = vmatpush3.msra.mxu1 %v1834_v24 }
  0x86   : > { %1233 = vmatprep.subr.mxu0 %v1937_v30  ;;  %1260 = vmatprep.subr.mxu1 %v1840_v27 }
  0x87   : > { %1234 = vmatpush3.msra.mxu0 %v1937_v30  ;;  %1261 = vmatpush3.msra.mxu1 %v1840_v27 }
  0x88   : > { %1235 = vmatprep.subr.mxu0 %v1955_v40  ;;  %1262 = vmatprep.subr.mxu1 %v1859_v34 }
  0x89   : > { %1236 = vmatpush3.msra.mxu0 %v1955_v40  ;;  %1263 = vmatpush3.msra.mxu1 %v1859_v34 }
  0x8a   : > { %1237 = vmatprep.subr.mxu0 %v1967_v51  ;;  %1264 = vmatprep.subr.mxu1 %v1877_v45 }
  0x8b   : > { %1238 = vmatpush3.msra.mxu0 %v1967_v51  ;;  %1265 = vmatpush3.msra.mxu1 %v1877_v45 }
  0x8c   : > { %1239 = vmatprep.subr.mxu0 %v1977_v59  ;;  %1266 = vmatprep.subr.mxu1 %v1883_v47 }
  0x8d   : > { %1240 = vmatpush3.msra.mxu0 %v1977_v59  ;;  %1241 = vmatprep.mubr.f32.mxu0 %v1934_v25 }
  0x8e   : > { %1267 = vmatpush3.msra.mxu1 %v1883_v47  ;;  %1242 = vmatmul.mubr.f32.vlgmr.msra.gmra.mxu0 %v1943_v32 }
  0x8f   : > { %1268 = vmatprep.subr.mxu1 %v1902_v57  ;;  %1279 = vmatprep.subr.mxu0 %v1826_v21 }
  0x90   : > { %1269 = vmatpush3.msra.mxu1 %v1902_v57  ;;  %1280 = vmatpush3.msra.mxu0 %v1826_v21 }
  0x91   : > { %1270 = vmatprep.subr.mxu1 %v1925_v8  ;;  %1281 = vmatprep.subr.mxu0 %v1829_v22 }
  0x92   : > { %1271 = vmatpush3.msra.mxu1 %v1925_v8  ;;  %1282 = vmatpush3.msra.mxu0 %v1829_v22 }
  0x93   : > { %1272 = vmatprep.subr.mxu1 %v1940_v31  ;;  %1283 = vmatprep.subr.mxu0 %v1832_v23 }
  0x94   : > { %1273 = vmatpush3.msra.mxu1 %v1940_v31  ;;  %1284 = vmatpush3.msra.mxu0 %v1832_v23 }
  0x95   : > { %1274 = vmatprep.subr.mxu1 %v1952_v38  ;;  %1285 = vmatprep.subr.mxu0 %v1838_v26 }
  0x96   : > { %1275 = vmatpush3.msra.mxu1 %v1952_v38  ;;  %1276 = vmatprep.mubr.f32.mxu1 %v2244_v14 }
  0x97   : > { %1286 = vmatpush3.msra.mxu0 %v1838_v26  ;;  %1277 = vmatmul.mubr.f32.vlgmr.msra.gmra.mxu1 %v2245_v15 }
  0x98   : > { %1287 = vmatprep.subr.mxu0 %v1843_v28  ;;  %1314 = vmatprep.subr.mxu1 %v1793_v3 }
  0x99   : > { %1288 = vmatpush3.msra.mxu0 %v1843_v28  ;;  %1315 = vmatpush3.msra.mxu1 %v1793_v3 }
  0x9a   : > { %1289 = vmatprep.subr.mxu0 %v1865_v39  ;;  %1316 = vmatprep.subr.mxu1 %v1795_v4 }
  0x9b   : > { %1290 = vmatpush3.msra.mxu0 %v1865_v39  ;;  %1317 = vmatpush3.msra.mxu1 %v1795_v4 }
  0x9c   : > { %1291 = vmatprep.subr.mxu0 %v1871_v42  ;;  %1318 = vmatprep.subr.mxu1 %v1797_v5 }
  0x9d   : > { %1292 = vmatpush3.msra.mxu0 %v1871_v42  ;;  %1319 = vmatpush3.msra.mxu1 %v1797_v5 }
  0x9e   : > { %1293 = vmatprep.subr.mxu0 %v1891_v52  ;;  %1320 = vmatprep.subr.mxu1 %v1799_v9 }
  0x9f   : > { %1294 = vmatpush3.msra.mxu0 %v1891_v52  ;;  %1321 = vmatpush3.msra.mxu1 %v1799_v9 }
  0xa0   : > { %1295 = vmatprep.subr.mxu0 %v1905_v58  ;;  %1322 = vmatprep.subr.mxu1 %v1801_v10 }
  0xa1   : > { %1296 = vmatpush3.msra.mxu0 %v1905_v58  ;;  %1323 = vmatpush3.msra.mxu1 %v1801_v10 }
  0xa2   : > { %1297 = vmatprep.subr.mxu0 %v1919_v1  ;;  %1324 = vmatprep.subr.mxu1 %v1803_v11 }
  0xa3   : > { %1298 = vmatpush3.msra.mxu0 %v1919_v1  ;;  %1325 = vmatpush3.msra.mxu1 %v1803_v11 }
  0xa4   : > { %1299 = vmatprep.subr.mxu0 %v1931_v13  ;;  %1326 = vmatprep.subr.mxu1 %v1812_v16 }
  0xa5   : > { %1300 = vmatpush3.msra.mxu0 %v1931_v13  ;;  %1327 = vmatpush3.msra.mxu1 %v1812_v16 }
  0xa6   : > { %1301 = vmatprep.subr.mxu0 %v1949_v37  ;;  %1328 = vmatprep.subr.mxu1 %v1834_v24 }
  0xa7   : > { %1302 = vmatpush3.msra.mxu0 %v1949_v37  ;;  %1329 = vmatpush3.msra.mxu1 %v1834_v24 }
  0xa8   : > { %1303 = vmatprep.subr.mxu0 %v1962_v49  ;;  %1330 = vmatprep.subr.mxu1 %v1840_v27 }
  0xa9   : > { %1304 = vmatpush3.msra.mxu0 %v1962_v49  ;;  %1331 = vmatpush3.msra.mxu1 %v1840_v27 }
  0xaa   : > { %1305 = vmatprep.subr.mxu0 %v1974_v56  ;;  %1332 = vmatprep.subr.mxu1 %v1859_v34 }
  0xab   : > { %1306 = vmatpush3.msra.mxu0 %v1974_v56  ;;  %1333 = vmatpush3.msra.mxu1 %v1859_v34 }
  0xac   : > { %1307 = vmatprep.subr.mxu0 %v1990_v12  ;;  %1334 = vmatprep.subr.mxu1 %v1877_v45 }
  0xad   : > { %1308 = vmatpush3.msra.mxu0 %v1990_v12  ;;  %1335 = vmatpush3.msra.mxu1 %v1877_v45 }
  0xae   : > { %1309 = vmatprep.subr.mxu0 %v1997_v36  ;;  %1336 = vmatprep.subr.mxu1 %v1883_v47 }
  0xaf   : > { %1310 = vmatpush3.msra.mxu0 %v1997_v36  ;;  %1311 = vmatprep.mubr.f32.mxu0 %v1910_v61 }
  0xb0   : > { %1337 = vmatpush3.msra.mxu1 %v1883_v47  ;;  %1312 = vmatmul.mubr.f32.vlgmr.msra.gmra.mxu0 %v1913_v62 }
  0xb1   : > { %1338 = vmatprep.subr.mxu1 %v1902_v57  ;;  %1346 = vmatprep.mubr.f32.mxu1 %v1910_v61 }
  0xb2   : > { %1339 = vmatpush3.msra.mxu1 %v1902_v57 }
  0xb3   : > { %1340 = vmatprep.subr.mxu1 %v1925_v8 }
  0xb4   : > { %1341 = vmatpush3.msra.mxu1 %v1925_v8 }
  0xb5   : > { %1342 = vmatprep.subr.mxu1 %v1940_v31 }
  0xb6   : > { %1343 = vmatpush3.msra.mxu1 %v1940_v31 }
  0xb7   : > { %1344 = vmatprep.subr.mxu1 %v1952_v38 }
  0xb8   : > { %1345 = vmatpush3.msra.mxu1 %v1952_v38 }
  0xb9   : > { %1347 = vmatmul.mubr.f32.vlgmr.msra.gmra.mxu1 %v1913_v62 }
 0x12d   : > { %v1173_v3 = vpop.f32.mrf.mxu0 }
 0x12f   : > { %v306_v4 = vpop.f32.mrf.mxu0 }
 0x135   : > { %v1208_v5 = vpop.f32.mrf.mxu1 }
 0x136   : > { %v474_v17 = vadd.f32 %v1208_v5, %v1173_v3 }
 0x137   : > { %v467_v10 = vpop.f32.mrf.mxu1 }
 0x138   : > { %v468_v20 = vadd.f32 %v467_v10, %v306_v4 }
 0x14e   : > { %v1243_v9 = vpop.f32.mrf.mxu0 }
 0x14f   : > { %v585_v21 = vadd.f32 %v1243_v9, %v474_v17 }
 0x150   : > { %v577_v11 = vpop.f32.mrf.mxu0 }
 0x151   : > { %v578_v23 = vadd.f32 %v577_v11, %v468_v20 }
 0x157   : > { %v1278_v16 = vpop.f32.mrf.mxu1 }
 0x158   : > { %v682_v24 = vadd.f32 %v1278_v16, %v585_v21 }
 0x159   : > { %v673_v22 = vpop.f32.mrf.mxu1 }
 0x15a   : > { %v674_v27 = vadd.f32 %v673_v22, %v578_v23 }
 0x170   : > { %v1313_v19 = vpop.f32.mrf.mxu0 }
 0x171   : > { %v807_v28 = vadd.f32 %v1313_v19, %v682_v24 }
 0x172   : > { %v800_v26 = vpop.f32.mrf.mxu0 }
 0x173   : > { %v801_v33 = vadd.f32 %v800_v26, %v674_v27 }
 0x179   : > { %v1348_v29 = vpop.f32.mrf.mxu1 }
 0x17a   : > { %v900_v34 = vadd.f32 %v1348_v29, %v807_v28 }
 0x17b   : > { %v893_v39 = vpop.f32.mrf.mxu1 }
 0x17c   : > { %904 = vst [vmem:[%s197_s23 + $0x8] sm:$0xff] %v900_v34  ;;  %v894_v42 = vadd.f32 %v893_v39, %v801_v33 }
 0x17e   : > { %903 = vst [vmem:[%s197_s23] sm:$0xff] %v894_v42 }
 0x17f   : > { %1519 = shalt.err (!%p1516_p6)
}
 0x180   : > { %s1520_s27 = scalar_lea.hbm %s2154_s7, 256  ;;  %s1524_s6 = scalar_lea.hbm %s2213_s2, 512 }
 0x181   : > { %p1521_p7 = scmp.ne.s32.totalorder %s2154_s7, %s1520_s27  ;;  %p1525_p12 = scmp.lt.s32.totalorder %s2154_s7, %s2213_s2 }
 0x182   : > { %p1526_p1 = scmp.lt.s32.totalorder %s1524_s6, %s1520_s27 }
 0x183   : > { %p1522_p9 = pnand %p1521_p7, %p2246_p0 }
 0x184   : > { %p1527_p3 = por %p1526_p1, %p1525_p12 }
 0x185   : > { %p1523_p10 = pneg %p1522_p9 }
 0x187   : > { %p1528_p5 = pnand %p1527_p3, %p1523_p10 }
 0x189   : > { %1531 = shalt.err (!%p1528_p5)
}
 0x18a   : > { %s1622_s29 = smov 128   ;;  %s1623_s12 = smov 256  }
 0x18b   : > { %s1624_s9 = smov 8  }
 0x18c   : > { %1355 = dma.vmem_to_hbm [thread:$0]  (%p2246_p0), %s2149_s25, 256, %s2154_s7, %s2156_s28, %s1622_s29, %s1623_s12, %s1624_s9  }
 0x18d PF: > { %s2247_s20 = sld [smem:[#allocation11_spill]] }
 0x18e   : > { %s2248_s23 = sld [smem:[#allocation13_spill]] }
 0x18f   : > { %s2249_s26 = sld [smem:[#allocation12_spill]] }
 0x193   : > { %s936_s3 = sand.u32 1, %s2247_s20  }
 0x194   : > { %p2250_p8 = scmp.ne.s32.totalorder %s2248_s23, 0  ;;  %s937_s4 = scalar_lea.sflag [#allocation4], %s936_s3 }
 0x195   : > { %p2251_p4 = scmp.ge.s32.totalorder %s2249_s26, 2 }
 0x197   : > { %p1366_p11 = pnand %p2251_p4, %p2250_p8 }
 0x199   : > { %p1367_p13 = pneg %p1366_p11 }
 0x19b   : > { %1577 = dma.done.wait (%p1367_p13), %s937_s4, 256  }
 0x19c   : > { %1579 = vsyncadd (%p1367_p13), %s937_s4, 4294967040  ;;  %s19_s17 = sadd.s32 1, %s2249_s26   ;;  %s2252_s24 = sld [smem:[#allocation14_spill]] }
 0x19d   : > { %p16_p2 = scmp.ge.s32.totalorder %s19_s17, 4   ;;  %s2253_s9 = smov %s1586_s10 }
 0x19e   : > { %s2254_s10 = smov %s1590_s11  ;;  %s2255_s11 = smov %s1766_s5 }
 0x19f   : > { %s2256_s12 = smov %s1598_s13  ;;  %s2257_s13 = smov %s1602_s14 }
 0x1a0   : > { %s2258_s14 = smov %s1771_s1  ;;  %s2259_s15 = smov %s1610_s16 }
 0x1a1   :  { %18 = sbr.rel (!%p16_p2) target bundleno = 11 (0xb), region = 77 }
 0x1a2   : > { %s2260_s16 = smov %s2252_s24 }
 0x1a6   :  { %942 = vsyncpa [#allocation3], 1 }
 0x1a7   :  { %944 = vsyncpa [#allocation3 + $0x1], 1 }
 0x1a8   :  { %945 = vsyncpa [#allocation6], 1 }
 0x1a9   :  { %946 = vsyncpa [#allocation4], 1 }
 0x1aa   :  { %948 = vsyncpa [#allocation4 + $0x1], 1 }

</bundles_post_ra>
